<compile_context>
chip_gen: v5e
topology: v5e:2x2
jax: 0.10.0
libtpu: 0.0.40
codegen_flags: <defaults>
</compile_context>

<pallas_src>
import jax
import jax.numpy as jnp
from jax.experimental import pallas as pl
from jax.experimental.pallas import tpu as pltpu

IN_DIM = 28 * 28            # 784
COMPRESS_NUM = 32           # bottleneck ("compress_num") of the PyTorch module
C_PAD = 128                 # lane-dense padded bottleneck width
DEFAULT_TILE_B = 2048       # batch rows per grid step (multiple of 8)

_LANE = 128
_SUBLANE = 8
_HEADROOM = 8 << 20         # Mosaic internal scratch slack


def _round_up(x, m):
    return (x + m - 1) // m * m


def _vmem_tile_bytes(rows, cols, itemsize):
    """Bytes one (rows, cols) tile occupies in VMEM after (8,128) padding."""
    return _round_up(max(rows, 1), _SUBLANE) * _round_up(max(cols, 1), _LANE) * itemsize


def _vmem_budget(tb, C, x_dtype, w_dtype, out_dtype):
    """Conservative VMEM footprint for one pipelined grid step."""
    xi = jnp.dtype(x_dtype).itemsize
    wi = jnp.dtype(w_dtype).itemsize
    oi = jnp.dtype(out_dtype).itemsize
    # double-buffered I/O tiles
    io = 2 * _vmem_tile_bytes(tb, IN_DIM, xi) + 2 * _vmem_tile_bytes(tb, IN_DIM, oi)
    # resident params (still allocated with 2 buffers by the pipeliner)
    params = 2 * (_vmem_tile_bytes(IN_DIM, C, wi) + _vmem_tile_bytes(1, C, wi)
                  + _vmem_tile_bytes(C, IN_DIM, wi) + _vmem_tile_bytes(1, IN_DIM, wi))
    # in-kernel f32 intermediates: h (tb, C) and y (tb, 784) (+ bf16 copy slack)
    interm = _vmem_tile_bytes(tb, C, 4) + 2 * _vmem_tile_bytes(tb, IN_DIM, 4)
    return io + params + interm


def _vmem_capacity_bytes():
    try:
        return int(pltpu.get_tpu_info().vmem_capacity_bytes)
    except Exception:
        return 64 << 20     # conservative (v7x per-TC VMEM)


def _bf16_activations_default():
    """bf16 bias-add/tanh only on chips with bf16 VPU/EUP (v6e, v7x)."""
    try:
        kind = jax.devices()[0].device_kind.lower()
    except Exception:
        return True
    return not any(t in kind for t in ("v2", "v3", "v4", "v5"))


def _make_kernel(bf16_tanh):
    def _ae_kernel(x_ref, w1_ref, b1_ref, w2_ref, b2_ref, o_ref):
        # encoder: sigmoid(x @ W1 + b1) — bf16 MXU inputs, f32 accumulation.
        # (x may arrive as f32; cast here on VPU slack instead of a separate
        #  HBM pass in the caller.)
        h = jnp.dot(x_ref[...].astype(w1_ref.dtype), w1_ref[...],
                    preferred_element_type=jnp.float32)
        h = jax.nn.sigmoid(h + b1_ref[...].astype(jnp.float32))
        # decoder: tanh(h @ W2 + b2)
        y = jnp.dot(h.astype(w2_ref.dtype), w2_ref[...],
                    preferred_element_type=jnp.float32)
        y = y + b2_ref[...].astype(jnp.float32)
        if bf16_tanh:
            # big (tb, 784) tanh stream in bf16 -> ~2x EUP rate on v6e/v7x;
            # output is (at most) bf16-precision anyway.
            y = jnp.tanh(y.astype(jnp.bfloat16))
        else:
            y = jnp.tanh(y)
        o_ref[...] = y.astype(o_ref.dtype)
    return _ae_kernel


def autoencoder_forward(x, w1, b1, w2, b2, *, tile_b=DEFAULT_TILE_B,
                        out_dtype=None, bf16_activations=None):
    """x: [B, 784]; w1: [784, C]; b1: [1, C]; w2: [C, 784]; b2: [1, 784].

    Params are expected pre-transposed ([in, out]), bf16, and lane-padded —
    see prepare_params().  Returns [B, 784] in `out_dtype` (default x.dtype).
    """
    B, D = x.shape
    assert D == IN_DIM, f"expected {IN_DIM} features, got {D}"
    C = w1.shape[1]
    assert C % _LANE == 0, "pass params through prepare_params() (C must be a multiple of 128)"
    assert b1.shape == (1, C) and w2.shape == (C, IN_DIM) and b2.shape == (1, IN_DIM)
    out_dtype = out_dtype if out_dtype is not None else x.dtype
    if bf16_activations is None:
        bf16_activations = _bf16_activations_default()

    # ---- batch tile selection -------------------------------------------
    # multiple of 8 sublanes, no bigger than needed
    tb = max(_SUBLANE, _round_up(min(tile_b, B), _SUBLANE))
    # guarantee >= 2 grid steps when B allows it, so ("parallel",) shards the
    # batch axis across both TensorCores on v7x
    tb = min(tb, _round_up(pl.cdiv(B, 2), _SUBLANE))
    # shrink until the pipelined working set fits the detected VMEM capacity
    cap = max(32 << 20, _vmem_capacity_bytes() - (16 << 20))
    while tb > _SUBLANE and _vmem_budget(tb, C, x.dtype, w1.dtype, out_dtype) + _HEADROOM > cap:
        tb = max(_SUBLANE, _round_up(tb // 2, _SUBLANE))

    grid = (pl.cdiv(B, tb),)   # no wrapper-side padding; last block is partial
    vmem_limit = int(min(_vmem_budget(tb, C, x.dtype, w1.dtype, out_dtype) + _HEADROOM, cap))

    return pl.pallas_call(
        _make_kernel(bf16_activations),
        out_shape=jax.ShapeDtypeStruct((B, IN_DIM), out_dtype),
        grid=grid,
        in_specs=[
            pl.BlockSpec((tb, IN_DIM), lambda i: (i, 0)),      # x: tiled on batch
            pl.BlockSpec((IN_DIM, C), lambda i: (0, 0)),       # W1: VMEM-resident
            pl.BlockSpec((1, C), lambda i: (0, 0)),            # b1: VMEM-resident
            pl.BlockSpec((C, IN_DIM), lambda i: (0, 0)),       # W2: VMEM-resident
            pl.BlockSpec((1, IN_DIM), lambda i: (0, 0)),       # b2: VMEM-resident
        ],
        out_specs=pl.BlockSpec((tb, IN_DIM), lambda i: (i, 0)),
        compiler_params=pltpu.CompilerParams(
            dimension_semantics=("parallel",),   # batch axis over v7x's 2 TCs
            vmem_limit_bytes=vmem_limit,
        ),
    )(x, w1, b1, w2, b2)


def init_params(key, compress_num=COMPRESS_NUM):
    """PyTorch-style uniform(-1/sqrt(fan_in), 1/sqrt(fan_in)) init (f32)."""
    k1, k2, k3, k4 = jax.random.split(key, 4)
    bound1 = 1.0 / jnp.sqrt(jnp.float32(IN_DIM))
    bound2 = 1.0 / jnp.sqrt(jnp.float32(compress_num))
    # stored as [in, out] (transpose of torch's [out, in]) so the kernel does x @ W
    w1 = jax.random.uniform(k1, (IN_DIM, compress_num), jnp.float32, -bound1, bound1)
    b1 = jax.random.uniform(k2, (compress_num,), jnp.float32, -bound1, bound1)
    w2 = jax.random.uniform(k3, (compress_num, IN_DIM), jnp.float32, -bound2, bound2)
    b2 = jax.random.uniform(k4, (IN_DIM,), jnp.float32, -bound2, bound2)
    return w1, b1, w2, b2


def prepare_params(w1, b1, w2, b2, *, c_pad=C_PAD, dtype=jnp.bfloat16):
    """One-time setup: cast params to bf16 (halves HBM traffic) and zero-pad the
    bottleneck to a lane-dense width.  Padded hidden units output sigmoid(0)=0.5
    but multiply all-zero decoder rows, so the forward pass is unchanged."""
    C = w1.shape[1]
    cp = max(_round_up(C, _LANE), c_pad)
    w1p = jnp.zeros((IN_DIM, cp), dtype).at[:, :C].set(w1.astype(dtype))
    b1p = jnp.zeros((1, cp), dtype).at[:, :C].set(b1.reshape(1, C).astype(dtype))
    w2p = jnp.zeros((cp, IN_DIM), dtype).at[:C, :].set(w2.astype(dtype))
    b2p = b2.reshape(1, IN_DIM).astype(dtype)
    return w1p, b1p, w2p, b2p


def _reference(x, w1p, b1p, w2p, b2p, out_dtype, bf16_tanh):
    """Pure-JAX reference mirroring the kernel's dtype handling."""
    f32 = jnp.float32
    h = jax.nn.sigmoid(x.astype(w1p.dtype).astype(f32) @ w1p.astype(f32)
                       + b1p.astype(f32))
    y = (h.astype(w2p.dtype).astype(f32) @ w2p.astype(f32)) + b2p.astype(f32)
    y = jnp.tanh(y.astype(jnp.bfloat16)) if bf16_tanh else jnp.tanh(y)
    return y.astype(out_dtype)


if __name__ == "__main__":
    key = jax.random.PRNGKey(0)
    kx, kp, kx2 = jax.random.split(key, 3)

    w1, b1, w2, b2 = init_params(kp)
    params = prepare_params(w1, b1, w2, b2)   # bf16, bottleneck padded 32 -> 128
    bf16_act = _bf16_activations_default()

    # --- small check: f32 x passed straight in (in-kernel cast path), 1 step ---
    B = 8
    x = jax.random.uniform(kx, (B, IN_DIM), jnp.float32)
    out = jax.block_until_ready(autoencoder_forward(x, *params))
    ref = _reference(x, *params, out_dtype=out.dtype, bf16_tanh=bf16_act)
    assert out.shape == (B, IN_DIM)
    assert jnp.allclose(out.astype(jnp.float32), ref.astype(jnp.float32),
                        atol=2e-2, rtol=2e-2)

    # --- multi-step grid with a partial last block (300 rows, tile<=128 -> 3 steps) ---
    B2 = 300
    x2 = jax.random.uniform(kx2, (B2, IN_DIM), jnp.bfloat16)
    out2 = jax.block_until_ready(autoencoder_forward(x2, *params, tile_b=128))
    ref2 = _reference(x2, *params, out_dtype=out2.dtype, bf16_tanh=bf16_act)
    assert out2.shape == (B2, IN_DIM)
    assert jnp.allclose(out2.astype(jnp.float32), ref2.astype(jnp.float32),
                        atol=2e-2, rtol=2e-2)

    print("KERNEL_OK")
</pallas_src>

<mosaic_0001>
module attributes {stable_mosaic.version = 11 : i64} {
  func.func @_ae_kernel(%arg0: i32, %arg1: memref<8x784xf32, #tpu.memory_space<vmem>>, %arg2: memref<784x128xbf16, #tpu.memory_space<vmem>>, %arg3: memref<1x128xbf16, #tpu.memory_space<vmem>>, %arg4: memref<128x784xbf16, #tpu.memory_space<vmem>>, %arg5: memref<1x784xbf16, #tpu.memory_space<vmem>>, %arg6: memref<8x784xf32, #tpu.memory_space<vmem>>) attributes {dimension_semantics = [#tpu.dimension_semantics<parallel>], iteration_bounds = array<i64: 1>, scalar_prefetch = 0 : i64, scratch_operands = 0 : i64, tpu.core_type = #tpu.core_type<tc>, window_params = [{transform_indices = @transform_0, window_bounds = array<i64: 8, 784>}, {pipeline_mode = #tpu.pipeline_mode<synchronous>, transform_indices = @transform_1, window_bounds = array<i64: 784, 128>}, {pipeline_mode = #tpu.pipeline_mode<synchronous>, transform_indices = @transform_2, window_bounds = array<i64: 1, 128>}, {pipeline_mode = #tpu.pipeline_mode<synchronous>, transform_indices = @transform_3, window_bounds = array<i64: 128, 784>}, {pipeline_mode = #tpu.pipeline_mode<synchronous>, transform_indices = @transform_4, window_bounds = array<i64: 1, 784>}, {transform_indices = @transform_5, window_bounds = array<i64: 8, 784>}]} {
    %c0 = arith.constant 0 : index
    %c0_0 = arith.constant 0 : index
    %0 = vector.load %arg1[%c0, %c0_0] : memref<8x784xf32, #tpu.memory_space<vmem>>, vector<8x784xf32>
    %1 = arith.truncf %0 : vector<8x784xf32> to vector<8x784xbf16>
    %c0_1 = arith.constant 0 : index
    %c0_2 = arith.constant 0 : index
    %2 = vector.load %arg2[%c0_1, %c0_2] : memref<784x128xbf16, #tpu.memory_space<vmem>>, vector<784x128xbf16>
    %cst = arith.constant dense<0.000000e+00> : vector<8x128xf32>
    %3 = tpu.matmul %1, %2, %cst {dimension_numbers = #tpu.dot_dimension_numbers<[1], [0], [0], [1], [0, 0, 1, 1], [], []>} : vector<8x784xbf16>, vector<784x128xbf16>, vector<8x128xf32> -> vector<8x128xf32>
    %c0_3 = arith.constant 0 : index
    %c0_4 = arith.constant 0 : index
    %4 = vector.load %arg3[%c0_3, %c0_4] : memref<1x128xbf16, #tpu.memory_space<vmem>>, vector<1x128xbf16>
    %5 = arith.extf %4 : vector<1x128xbf16> to vector<1x128xf32>
    %6 = vector.broadcast %5 : vector<1x128xf32> to vector<8x128xf32>
    %7 = arith.addf %3, %6 : vector<8x128xf32>
    %8 = arith.negf %7 : vector<8x128xf32>
    %9 = math.exp %8 : vector<8x128xf32>
    %cst_5 = arith.constant 1.000000e+00 : f32
    %10 = vector.broadcast %cst_5 : f32 to vector<8x128xf32>
    %11 = arith.addf %10, %9 : vector<8x128xf32>
    %12 = arith.divf %10, %11 : vector<8x128xf32>
    %13 = arith.truncf %12 : vector<8x128xf32> to vector<8x128xbf16>
    %c0_6 = arith.constant 0 : index
    %c0_7 = arith.constant 0 : index
    %14 = vector.load %arg4[%c0_6, %c0_7] : memref<128x784xbf16, #tpu.memory_space<vmem>>, vector<128x784xbf16>
    %cst_8 = arith.constant dense<0.000000e+00> : vector<8x784xf32>
    %15 = tpu.matmul %13, %14, %cst_8 {dimension_numbers = #tpu.dot_dimension_numbers<[1], [0], [0], [1], [0, 0, 1, 1], [], []>} : vector<8x128xbf16>, vector<128x784xbf16>, vector<8x784xf32> -> vector<8x784xf32>
    %c0_9 = arith.constant 0 : index
    %c0_10 = arith.constant 0 : index
    %16 = vector.load %arg5[%c0_9, %c0_10] : memref<1x784xbf16, #tpu.memory_space<vmem>>, vector<1x784xbf16>
    %17 = arith.extf %16 : vector<1x784xbf16> to vector<1x784xf32>
    %18 = vector.broadcast %17 : vector<1x784xf32> to vector<8x784xf32>
    %19 = arith.addf %15, %18 : vector<8x784xf32>
    %20 = arith.truncf %19 : vector<8x784xf32> to vector<8x784xbf16>
    %21 = math.tanh %20 : vector<8x784xbf16>
    %22 = arith.extf %21 : vector<8x784xbf16> to vector<8x784xf32>
    %c0_11 = arith.constant 0 : index
    %c0_12 = arith.constant 0 : index
    %23 = vector.load %arg6[%c0_11, %c0_12] : memref<8x784xf32, #tpu.memory_space<vmem>>, vector<8x784xf32>
    tpu.vector_store %arg6[%c0_11, %c0_12], %22 {strides = array<i32>} : memref<8x784xf32, #tpu.memory_space<vmem>>, vector<8x784xf32>,
    return
  }
  func.func @transform_0(%arg0: i32) -> (i32, i32) {
    %c0_i32 = arith.constant 0 : i32
    %c0_i32_0 = arith.constant 0 : i32
    return %arg0, %c0_i32 : i32, i32
  }
  func.func @transform_1(%arg0: i32) -> (i32, i32) {
    %c0_i32 = arith.constant 0 : i32
    %c0_i32_0 = arith.constant 0 : i32
    %c0_i32_1 = arith.constant 0 : i32
    return %c0_i32, %c0_i32_0 : i32, i32
  }
  func.func @transform_2(%arg0: i32) -> (i32, i32) {
    %c0_i32 = arith.constant 0 : i32
    %c0_i32_0 = arith.constant 0 : i32
    %c0_i32_1 = arith.constant 0 : i32
    return %c0_i32, %c0_i32_0 : i32, i32
  }
  func.func @transform_3(%arg0: i32) -> (i32, i32) {
    %c0_i32 = arith.constant 0 : i32
    %c0_i32_0 = arith.constant 0 : i32
    %c0_i32_1 = arith.constant 0 : i32
    return %c0_i32, %c0_i32_0 : i32, i32
  }
  func.func @transform_4(%arg0: i32) -> (i32, i32) {
    %c0_i32 = arith.constant 0 : i32
    %c0_i32_0 = arith.constant 0 : i32
    %c0_i32_1 = arith.constant 0 : i32
    return %c0_i32, %c0_i32_0 : i32, i32
  }
  func.func @transform_5(%arg0: i32) -> (i32, i32) {
    %c0_i32 = arith.constant 0 : i32
    %c0_i32_0 = arith.constant 0 : i32
    return %arg0, %c0_i32 : i32, i32
  }
}

</mosaic_0001>

<bundles_post_ra>
// kernel: tpu_custom_call.1
= control target key start
LH: loop header
LB: loop body
LE: loop exit
PB: predicated region body
PF: predicated region fallthrough
CT: control target
= control target key end

     0   :  { %s2203_s0 = inlined_call_operand.vmem [shape: f32[8,784], index: 0, kind: input, shape index: {}]   ;;  %s2204_s1 = inlined_call_operand.vmem [shape: bf16[784,128], index: 1, kind: input, shape index: {}]   ;;  %s2205_s2 = inlined_call_operand.vmem [shape: bf16[1,128], index: 2, kind: input, shape index: {}]   ;;  %s2206_s3 = inlined_call_operand.vmem [shape: bf16[128,784], index: 3, kind: input, shape index: {}]   ;;  %s2207_s4 = inlined_call_operand.vmem [shape: bf16[1,784], index: 4, kind: input, shape index: {}]   ;;  %s2208_s5 = inlined_call_operand.hbm [shape: f32[8,784], index: 5, kind: output, shape index: {}]  }
   0x1   :  { %v1502_v0 = vld [vmem:[%s2204_s1 + $0x38] sm:$0xff]  ;;  %v1501_v3 = vld [vmem:[%s2204_s1 + $0x30] sm:$0xff]  ;;  %v1500_v8 = vld [vmem:[%s2204_s1 + $0x28] sm:$0xff] }
   0x2   :  { %v1510_v1 = vld [vmem:[%s2204_s1 + $0x78] sm:$0xff]  ;;  %435 = vmatpush.bf16.msra.mxu0 %v1502_v0  ;;  %v1509_v4 = vld [vmem:[%s2204_s1 + $0x70] sm:$0xff]  ;;  %v1508_v9 = vld [vmem:[%s2204_s1 + $0x68] sm:$0xff] }
   0x3   :  { %v1518_v2 = vld [vmem:[%s2204_s1 + $0xb8] sm:$0xff]  ;;  %448 = vmatpush.bf16.msra.mxu1 %v1510_v1  ;;  %v1517_v5 = vld [vmem:[%s2204_s1 + $0xb0] sm:$0xff]  ;;  %v1516_v10 = vld [vmem:[%s2204_s1 + $0xa8] sm:$0xff] }
   0x4   :  { %461 = vmatpush.bf16.msra.mxu2 %v1518_v2  ;;  %v1526_v6 = vld [vmem:[%s2204_s1 + $0xf8] sm:$0xff]  ;;  %v1525_v7 = vld [vmem:[%s2204_s1 + $0xf0] sm:$0xff]  ;;  %v1524_v11 = vld [vmem:[%s2204_s1 + $0xe8] sm:$0xff] }
   0x5   :  { %474 = vmatpush.bf16.msra.mxu3 %v1526_v6  ;;  %v1499_v12 = vld [vmem:[%s2204_s1 + $0x20] sm:$0xff]  ;;  %v1498_v16 = vld [vmem:[%s2204_s1 + $0x18] sm:$0xff] }
   0x6   :  { %436 = vmatpush.bf16.msra.mxu0 %v1501_v3  ;;  %v1507_v13 = vld [vmem:[%s2204_s1 + $0x60] sm:$0xff]  ;;  %v1506_v17 = vld [vmem:[%s2204_s1 + $0x58] sm:$0xff] }
   0x7   :  { %449 = vmatpush.bf16.msra.mxu1 %v1509_v4  ;;  %v1515_v14 = vld [vmem:[%s2204_s1 + $0xa0] sm:$0xff]  ;;  %v1514_v18 = vld [vmem:[%s2204_s1 + $0x98] sm:$0xff] }
   0x8   :  { %462 = vmatpush.bf16.msra.mxu2 %v1517_v5  ;;  %v1523_v15 = vld [vmem:[%s2204_s1 + $0xe0] sm:$0xff] }
   0x9   :  { %475 = vmatpush.bf16.msra.mxu3 %v1525_v7 }
   0xa   :  { %437 = vmatpush.bf16.msra.mxu0 %v1500_v8 }
   0xb   :  { %450 = vmatpush.bf16.msra.mxu1 %v1508_v9 }
   0xc   :  { %463 = vmatpush.bf16.msra.mxu2 %v1516_v10 }
   0xd   :  { %476 = vmatpush.bf16.msra.mxu3 %v1524_v11 }
   0xe   :  { %438 = vmatpush.bf16.msra.mxu0 %v1499_v12 }
   0xf   :  { %451 = vmatpush.bf16.msra.mxu1 %v1507_v13 }
  0x10   :  { %464 = vmatpush.bf16.msra.mxu2 %v1515_v14 }
  0x11   :  { %10 = vsyncpa [#allocation3], 0  ;;  %477 = vmatpush.bf16.msra.mxu3 %v1523_v15  ;;  %v1522_v19 = vld [vmem:[%s2204_s1 + $0xd8] sm:$0xff]  ;;  %v1497_v20 = vld [vmem:[%s2204_s1 + $0x10] sm:$0xff]  ;;  %vm431_vm0 = vcmask 130048   ;;  %s1064_s10 = sshll.u32 %s2208_s5, 4  ;;  %s1065_s10 = int_to_ptr.hbm [resolvable:$true] %s1064_s10 }
  0x12   :  { %439 = vmatpush.bf16.msra.mxu0 %v1498_v16  ;;  %v1505_v21 = vld [vmem:[%s2204_s1 + $0x50] sm:$0xff]  ;;  %v1496_v24 = vld [vmem:[%s2204_s1 + $0x8] sm:$0xff]  ;;  %v1495_v27 = vld [vmem:[%s2204_s1] sm:$0xff] }
  0x13   :  { %452 = vmatpush.bf16.msra.mxu1 %v1506_v17  ;;  %v1513_v22 = vld [vmem:[%s2204_s1 + $0x90] sm:$0xff]  ;;  %v1504_v25 = vld [vmem:[%s2204_s1 + $0x48] sm:$0xff]  ;;  %v1503_v29 = vld [vmem:[%s2204_s1 + $0x40] sm:$0xff] }
  0x14   :  { %465 = vmatpush.bf16.msra.mxu2 %v1514_v18  ;;  %v1521_v23 = vld [vmem:[%s2204_s1 + $0xd0] sm:$0xff]  ;;  %v1512_v26 = vld [vmem:[%s2204_s1 + $0x88] sm:$0xff]  ;;  %v22_v30 = vld [vmem:[%s2203_s0] sm:$0xff] }
  0x15   :  { %478 = vmatpush.bf16.msra.mxu3 %v1522_v19  ;;  %v1520_v28 = vld [vmem:[%s2204_s1 + $0xc8] sm:$0xff]  ;;  %v1534_v32 = vld [vmem:[%s2204_s1 + $0x138] sm:$0xff]  ;;  %v1511_v34 = vld [vmem:[%s2204_s1 + $0x80] sm:$0xff]  ;;  %v29_v36 = vpack.c.bf16 %v22_v30, %v22_v30 }
  0x16   :  { %440 = vmatpush.bf16.msra.mxu0 %v1497_v20  ;;  %v23_v31 = vld [vmem:[%s2203_s0 + $0x8] sm:$0xff]  ;;  %v1542_v33 = vld [vmem:[%s2204_s1 + $0x178] sm:$0xff]  ;;  %v24_v35 = vld [vmem:[%s2203_s0 + $0x10] sm:$0xff] }
  0x17   :  { %453 = vmatpush.bf16.msra.mxu1 %v1505_v21  ;;  %v30_v37 = vpack.c.bf16 %v23_v31, %v23_v31  ;;  %v1519_v38 = vld [vmem:[%s2204_s1 + $0xc0] sm:$0xff]  ;;  %v25_v40 = vld [vmem:[%s2203_s0 + $0x18] sm:$0xff]  ;;  %v1533_v41 = vld [vmem:[%s2204_s1 + $0x130] sm:$0xff]  ;;  %v31_v43 = vpack.c.bf16 %v24_v35, %v24_v35 }
  0x18   :  { %466 = vmatpush.bf16.msra.mxu2 %v1513_v22  ;;  %v1543_v39 = vld [vmem:[%s2204_s1 + $0x180] sm:$0xff]  ;;  %v1541_v42 = vld [vmem:[%s2204_s1 + $0x170] sm:$0xff]  ;;  %v32_v44 = vpack.c.bf16 %v25_v40, %v25_v40  ;;  %v1532_v45 = vld [vmem:[%s2204_s1 + $0x128] sm:$0xff] }
  0x19   :  { %479 = vmatpush.bf16.msra.mxu3 %v1521_v23  ;;  %v1540_v46 = vld [vmem:[%s2204_s1 + $0x168] sm:$0xff]  ;;  %v1531_v47 = vld [vmem:[%s2204_s1 + $0x120] sm:$0xff]  ;;  %v1530_v49 = vld [vmem:[%s2204_s1 + $0x118] sm:$0xff] }
  0x1a   :  { %441 = vmatpush.bf16.msra.mxu0 %v1496_v24  ;;  %v1539_v48 = vld [vmem:[%s2204_s1 + $0x160] sm:$0xff]  ;;  %v1538_v50 = vld [vmem:[%s2204_s1 + $0x158] sm:$0xff]  ;;  %v28_v51 = vld [vmem:[%s2203_s0 + $0x30] sm:$0xff] }
  0x1b   :  { %454 = vmatpush.bf16.msra.mxu1 %v1504_v25  ;;  %v1529_v52 = vld [vmem:[%s2204_s1 + $0x110] sm:$0xff]  ;;  %v35_v54 = vpack.c.bf16 %v28_v51, %v28_v51  ;;  %v1528_v55 = vld [vmem:[%s2204_s1 + $0x108] sm:$0xff]  ;;  %v1527_v57 = vld [vmem:[%s2204_s1 + $0x100] sm:$0xff] }
  0x1c   :  { %467 = vmatpush.bf16.msra.mxu2 %v1512_v26  ;;  %v1537_v53 = vld [vmem:[%s2204_s1 + $0x150] sm:$0xff]  ;;  %v1536_v56 = vld [vmem:[%s2204_s1 + $0x148] sm:$0xff]  ;;  %v1535_v58 = vld [vmem:[%s2204_s1 + $0x140] sm:$0xff] }
  0x1d   :  { %480 = vmatpush.bf16.msra.mxu3 %v1520_v28  ;;  %v26_v59 = vld [vmem:[%s2203_s0 + $0x20] sm:$0xff]  ;;  %v27_v60 = vld [vmem:[%s2203_s0 + $0x28] sm:$0xff]  ;;  %v1477_v4 = vld [vmem:[%s2206_s3 + $0x190] sm:$0xf] }
  0x1e   :  { %442 = vmatpush.bf16.msra.mxu0 %v1495_v27  ;;  %v33_v61 = vpack.c.bf16 %v26_v59, %v26_v59  ;;  %v34_v62 = vpack.c.bf16 %v27_v60, %v27_v60  ;;  %v1469_v63 = vld [vmem:[%s2206_s3 + $0x188] sm:$0xf]  ;;  %v1596_v0 = vld [vmem:[%s2206_s3 + $0x1a0] sm:$0xf0]  ;;  %v1593_v1 = vld [vmem:[%s2206_s3 + $0x18c] sm:$0xf] }
  0x1f   :  { %455 = vmatpush.bf16.msra.mxu1 %v1503_v29  ;;  %v1470_v2 = vor.u32 %v1596_v0, %v1469_v63  ;;  %v1471_v3 = vld [vmem:[%s2206_s3 + $0x1a4] sm:$0xf0]  ;;  %v1597_v5 = vld [vmem:[%s2206_s3 + $0x1a8] sm:$0xf0]  ;;  %v1441_v8 = vld [vmem:[%s2206_s3 + $0x150] sm:$0xf] }
  0x20   :  { %468 = vmatpush.bf16.msra.mxu2 %v1511_v34  ;;  %v1474_v6 = vor.u32 %v1593_v1, %v1471_v3  ;;  %v1478_v7 = vor.u32 %v1597_v5, %v1477_v4  ;;  %v1589_v9 = vld [vmem:[%s2206_s3 + $0x168] sm:$0xf0]  ;;  %v1586_v10 = vld [vmem:[%s2206_s3 + $0x154] sm:$0xf]  ;;  %v1443_v12 = vld [vmem:[%s2206_s3 + $0x16c] sm:$0xf0] }
  0x21   :  { %443 = vmatmul.bf16.vlgmr.msra.gmra.mxu0 %v29_v36  ;;  %481 = vmatpush.bf16.msra.mxu3 %v1519_v38  ;;  %v1442_v11 = vor.u32 %v1589_v9, %v1441_v8  ;;  %v1449_v13 = vld [vmem:[%s2206_s3 + $0x158] sm:$0xf]  ;;  %v1590_v14 = vld [vmem:[%s2206_s3 + $0x170] sm:$0xf0]  ;;  %v1446_v15 = vor.u32 %v1586_v10, %v1443_v12  ;;  %v1579_v19 = vld [vmem:[%s2206_s3 + $0x11c] sm:$0xf] }
  0x22   :  { %487 = vmatpush.bf16.msrb.mxu0 %v1534_v32  ;;  %456 = vmatmul.bf16.vlgmr.msra.gmra.mxu1 %v30_v37  ;;  %v1450_v16 = vor.u32 %v1590_v14, %v1449_v13  ;;  %v1413_v17 = vld [vmem:[%s2206_s3 + $0x118] sm:$0xf]  ;;  %v1582_v18 = vld [vmem:[%s2206_s3 + $0x130] sm:$0xf0]  ;;  %v1421_v22 = vld [vmem:[%s2206_s3 + $0x120] sm:$0xf] }
  0x23   :  { %500 = vmatpush.bf16.msrb.mxu1 %v1542_v33  ;;  %469 = vmatmul.bf16.vlgmr.msra.gmra.mxu2 %v31_v43  ;;  %v1414_v20 = vor.u32 %v1582_v18, %v1413_v17  ;;  %v1415_v21 = vld [vmem:[%s2206_s3 + $0x134] sm:$0xf0]  ;;  %v1583_v23 = vld [vmem:[%s2206_s3 + $0x138] sm:$0xf0]  ;;  %v1385_v26 = vld [vmem:[%s2206_s3 + $0xe0] sm:$0xf] }
  0x24   :  { %520 = vmatpush.bf16.msrb.mxu2 %v1543_v39  ;;  %482 = vmatmul.bf16.vlgmr.msra.gmra.mxu3 %v32_v44  ;;  %v1418_v24 = vor.u32 %v1579_v19, %v1415_v21  ;;  %v1422_v25 = vor.u32 %v1583_v23, %v1421_v22  ;;  %v1575_v27 = vld [vmem:[%s2206_s3 + $0xf8] sm:$0xf0]  ;;  %v1572_v28 = vld [vmem:[%s2206_s3 + $0xe4] sm:$0xf]  ;;  %v1387_v32 = vld [vmem:[%s2206_s3 + $0xfc] sm:$0xf0] }
  0x25   :  { %924 = vmatpush.bf16.msrb.mxu3 %v1470_v2  ;;  %v1386_v31 = vor.u32 %v1575_v27, %v1385_v26  ;;  %v1393_v33 = vld [vmem:[%s2206_s3 + $0xe8] sm:$0xf]  ;;  %v1576_v34 = vld [vmem:[%s2206_s3 + $0x100] sm:$0xf0]  ;;  %v1390_v35 = vor.u32 %v1572_v28, %v1387_v32  ;;  %v1594_v37 = vld [vmem:[%s2206_s3 + $0x194] sm:$0xf] }
  0x26   :  { %488 = vmatpush.bf16.msrb.mxu0 %v1533_v41  ;;  %v1394_v36 = vor.u32 %v1576_v34, %v1393_v33  ;;  %v1479_v38 = vld [vmem:[%s2206_s3 + $0x1ac] sm:$0xf0]  ;;  %v134_v39 = vld [vmem:[%s2205_s2] sm:$0x1]  ;;  %v1357_v41 = vld [vmem:[%s2206_s3 + $0xa8] sm:$0xf] }
  0x27   :  { %501 = vmatpush.bf16.msrb.mxu1 %v1541_v42  ;;  %v1482_v40 = vor.u32 %v1594_v37, %v1479_v38  ;;  %v1568_v42 = vld [vmem:[%s2206_s3 + $0xc0] sm:$0xf0]  ;;  %v1565_v43 = vld [vmem:[%s2206_s3 + $0xac] sm:$0xf]  ;;  %v1451_v51 = vld [vmem:[%s2206_s3 + $0x174] sm:$0xf0] }
  0x28   :  { %937 = vmatpush.bf16.msra.mxu2 %v1474_v6  ;;  %v1358_v44 = vor.u32 %v1568_v42, %v1357_v41  ;;  %v1331_v60 = vld [vmem:[%s2206_s3 + $0x8c] sm:$0xf0]  ;;  %v1580_v2 = vld [vmem:[%s2206_s3 + $0x124] sm:$0xf]  ;;  %v1423_v3 = vld [vmem:[%s2206_s3 + $0x13c] sm:$0xf0] }
  0x29   :  { %925 = vmatpush.bf16.msrb.mxu3 %v1442_v11  ;;  %v1426_v6 = vor.u32 %v1580_v2, %v1423_v3  ;;  %v1554_v8 = vld [vmem:[%s2206_s3 + $0x50] sm:$0xf0]  ;;  %v1551_v9 = vld [vmem:[%s2206_s3 + $0x3c] sm:$0xf]  ;;  %v1303_v11 = vld [vmem:[%s2206_s3 + $0x54] sm:$0xf0] }
  0x2a   :  { %489 = vmatpush.bf16.msrb.mxu0 %v1532_v45  ;;  %v1359_v45 = vld [vmem:[%s2206_s3 + $0xc4] sm:$0xf0]  ;;  %v1309_v12 = vld [vmem:[%s2206_s3 + $0x40] sm:$0xf]  ;;  %v1555_v13 = vld [vmem:[%s2206_s3 + $0x58] sm:$0xf0]  ;;  %v1306_v14 = vor.u32 %v1551_v9, %v1303_v11 }
  0x2b   :  { %502 = vmatpush.bf16.msrb.mxu1 %v1540_v46  ;;  %v1365_v46 = vld [vmem:[%s2206_s3 + $0xb0] sm:$0xf]  ;;  %v1395_v17 = vld [vmem:[%s2206_s3 + $0x104] sm:$0xf0]  ;;  %v1273_v19 = vld [vmem:[%s2206_s3] sm:$0xf] }
  0x2c   :  { %938 = vmatpush.bf16.msra.mxu2 %v1446_v15  ;;  %v1310_v15 = vor.u32 %v1555_v13, %v1309_v12  ;;  %v1544_v21 = vld [vmem:[%s2206_s3 + $0x4] sm:$0xf]  ;;  %v1367_v32 = vld [vmem:[%s2206_s3 + $0xcc] sm:$0xf0]  ;;  %v1485_v33 = vld [vmem:[%s2206_s3 + $0x198] sm:$0xf] }
  0x2d   :  { %926 = vmatpush.bf16.msrb.mxu3 %v1414_v20  ;;  %v1547_v20 = vld [vmem:[%s2206_s3 + $0x18] sm:$0xf0]  ;;  %v1548_v26 = vld [vmem:[%s2206_s3 + $0x20] sm:$0xf0]  ;;  %v1487_v38 = vld [vmem:[%s2206_s3 + $0x1b4] sm:$0xf0] }
  0x2e   :  { %490 = vmatpush.bf16.msrb.mxu0 %v1531_v47  ;;  %v1569_v47 = vld [vmem:[%s2206_s3 + $0xc8] sm:$0xf0]  ;;  %v1274_v23 = vor.u32 %v1547_v20, %v1273_v19  ;;  %v1595_v37 = vld [vmem:[%s2206_s3 + $0x19c] sm:$0xf]  ;;  %v1493_v41 = vld [vmem:[%s2206_s3 + $0x1a0] sm:$0xf] }
  0x2f   :  { %503 = vmatpush.bf16.msrb.mxu1 %v1539_v48  ;;  %v1362_v48 = vor.u32 %v1565_v43, %v1359_v45  ;;  %v1599_v42 = vld [vmem:[%s2206_s3 + $0x1b8] sm:$0xf0]  ;;  %v1437_v3 = vld [vmem:[%s2206_s3 + $0x130] sm:$0xf]  ;;  %v1283_v9 = vld [vmem:[%s2206_s3 + $0x24] sm:$0xf0] }
  0x30   :  { %939 = vmatpush.bf16.msra.mxu2 %v1418_v24  ;;  %v1275_v24 = vld [vmem:[%s2206_s3 + $0x1c] sm:$0xf0]  ;;  %v1559_v45 = vld [vmem:[%s2206_s3 + $0x7c] sm:$0xf]  ;;  %v1409_v19 = vld [vmem:[%s2206_s3 + $0xf8] sm:$0xf] }
  0x31   :  { %927 = vmatpush.bf16.msrb.mxu3 %v1386_v31  ;;  %v1278_v28 = vor.u32 %v1544_v21, %v1275_v24  ;;  %v1578_v20 = vld [vmem:[%s2206_s3 + $0x110] sm:$0xf0]  ;;  %v1373_v24 = vld [vmem:[%s2206_s3 + $0xb8] sm:$0xf] }
  0x32   :  { %491 = vmatpush.bf16.msrb.mxu0 %v1530_v49  ;;  %v1366_v49 = vor.u32 %v1569_v47, %v1365_v46  ;;  %v1339_v46 = vld [vmem:[%s2206_s3 + $0x94] sm:$0xf0]  ;;  %v1457_v47 = vld [vmem:[%s2206_s3 + $0x160] sm:$0xf]  ;;  %v1410_v21 = vor.u32 %v1578_v20, %v1409_v19 }
  0x33   :  { %504 = vmatpush.bf16.msrb.mxu1 %v1538_v50  ;;  %1269 = vmatmul.msk.bf16.vlgmr.msrb.gmra.mxu2 %vm431_vm0, %v35_v54  ;;  %v1587_v50 = vld [vmem:[%s2206_s3 + $0x15c] sm:$0xf]  ;;  %v1329_v54 = vld [vmem:[%s2206_s3 + $0x70] sm:$0xf] }
  0x34   :  { %940 = vmatpush.bf16.msra.mxu2 %v1390_v35 }
  0x35   :  { %928 = vmatpush.bf16.msrb.mxu3 %v1358_v44  ;;  %v1494_v44 = vor.u32 %v1599_v42, %v1493_v41 }
  0x36   :  { %492 = vmatpush.bf16.msrb.mxu0 %v1529_v52  ;;  %v135_v52 = vunpack.c.l.bf16 %v134_v39 }
  0x37   :  { %505 = vmatpush.bf16.msrb.mxu1 %v1537_v53  ;;  %v1454_v53 = vor.u32 %v1587_v50, %v1451_v51  ;;  %v1459_v50 = vld [vmem:[%s2206_s3 + $0x17c] sm:$0xf0] }
  0x38   :  { %941 = vmatpush.bf16.msra.mxu2 %v1362_v48  ;;  %v136_v4 = vperm.slane %v135_v52, 0  ;;  %v1342_v48 = vor.u32 %v1559_v45, %v1339_v46  ;;  %v1564_v45 = vld [vmem:[%s2206_s3 + $0xa0] sm:$0xf0]  ;;  %v1317_v46 = vld [vmem:[%s2206_s3 + $0x48] sm:$0xf] }
  0x3a   :  { %493 = vmatpush.bf16.msrb.mxu0 %v1528_v55  ;;  %v1561_v55 = vld [vmem:[%s2206_s3 + $0x88] sm:$0xf0] }
  0x3b   :  { %506 = vmatpush.bf16.msrb.mxu1 %v1536_v56  ;;  %v1558_v56 = vld [vmem:[%s2206_s3 + $0x74] sm:$0xf]  ;;  %v1330_v59 = vor.u32 %v1561_v55, %v1329_v54  ;;  %v1592_v54 = vld [vmem:[%s2206_s3 + $0x180] sm:$0xf0] }
  0x3c   :  { %v1334_v0 = vor.u32 %v1558_v56, %v1331_v60 }
  0x3d   :  { %929 = vmatpush.bf16.msrb.mxu3 %v1330_v59  ;;  %v1429_v59 = vld [vmem:[%s2206_s3 + $0x128] sm:$0xf] }
  0x3e   :  { %494 = vmatpush.bf16.msrb.mxu0 %v1527_v57  ;;  %942 = vmatpush.bf16.msra.mxu2 %v1334_v0  ;;  %v1431_v0 = vld [vmem:[%s2206_s3 + $0x144] sm:$0xf0] }
  0x3f   :  { %507 = vmatpush.bf16.msrb.mxu1 %v1535_v58 }
  0x41   :  { %495 = vmatmul.bf16.vlgmr.msrb.gmra.mxu0 %v33_v61  ;;  %v1337_v61 = vld [vmem:[%s2206_s3 + $0x78] sm:$0xf] }
  0x42   :  { %508 = vmatmul.bf16.vlgmr.msrb.gmra.mxu1 %v34_v62  ;;  %950 = vmatpush.bf16.msra.mxu0 %v1478_v7  ;;  %v1562_v62 = vld [vmem:[%s2206_s3 + $0x90] sm:$0xf0]  ;;  %v1301_v7 = vld [vmem:[%s2206_s3 + $0x38] sm:$0xf] }
  0x43   :  { %963 = vmatpush.bf16.msra.mxu1 %v1482_v40  ;;  %v1338_v1 = vor.u32 %v1562_v62, %v1337_v61  ;;  %v1302_v10 = vor.u32 %v1554_v8, %v1301_v7  ;;  %943 = vmatpush.bf16.msra.mxu2 %v1306_v14  ;;  %v1490_v40 = vor.u32 %v1595_v37, %v1487_v38  ;;  %v1584_v62 = vld [vmem:[%s2206_s3 + $0x140] sm:$0xf0]  ;;  %v1545_v8 = vld [vmem:[%s2206_s3 + $0xc] sm:$0xf]  ;;  %v1574_v14 = vld [vmem:[%s2206_s3 + $0xf4] sm:$0xf] }
  0x44   :  { %v1286_v13 = vor.u32 %v1545_v8, %v1283_v9  ;;  %v1560_v37 = vld [vmem:[%s2206_s3 + $0x84] sm:$0xf] }
  0x45   :  { %930 = vmatpush.bf16.msrb.mxu3 %v1302_v10  ;;  %v1401_v10 = vld [vmem:[%s2206_s3 + $0xf0] sm:$0xf] }
  0x46   :  { %951 = vmatpush.bf16.msra.mxu0 %v1450_v16  ;;  %v1573_v16 = vld [vmem:[%s2206_s3 + $0xec] sm:$0xf] }
  0x47   :  { %964 = vmatpush.bf16.msra.mxu1 %v1454_v53  ;;  %v1398_v18 = vor.u32 %v1573_v16, %v1395_v17  ;;  %944 = vmatpush.bf16.msra.mxu2 %v1278_v28  ;;  %v1465_v53 = vld [vmem:[%s2206_s3 + $0x168] sm:$0xf] }
  0x48   :  { %v1466_v55 = vor.u32 %v1592_v54, %v1465_v53  ;;  %v1289_v54 = vld [vmem:[%s2206_s3 + $0x10] sm:$0xf] }
  0x49   :  { %931 = vmatpush.bf16.msrb.mxu3 %v1274_v23 }
  0x4a   :  { %952 = vmatpush.bf16.msra.mxu0 %v1422_v25  ;;  %v1281_v25 = vld [vmem:[%s2206_s3 + $0x8] sm:$0xf] }
  0x4b   :  { %965 = vmatpush.bf16.msra.mxu1 %v1426_v6  ;;  %v1282_v31 = vor.u32 %v1548_v26, %v1281_v25  ;;  %989 = vmatpush.bf16.msrb.mxu2 %v1490_v40  ;;  %v1570_v25 = vld [vmem:[%s2206_s3 + $0xd0] sm:$0xf0]  ;;  %v1567_v26 = vld [vmem:[%s2206_s3 + $0xbc] sm:$0xf]  ;;  %v1353_v40 = vld [vmem:[%s2206_s3 + $0x88] sm:$0xf] }
  0x4c   :  { %v1374_v28 = vor.u32 %v1570_v25, %v1373_v24 }
  0x4e   :  { %953 = vmatpush.bf16.msra.mxu0 %v1394_v36  ;;  %v1598_v36 = vld [vmem:[%s2206_s3 + $0x1b0] sm:$0xf0] }
  0x4f   :  { %966 = vmatpush.bf16.msra.mxu1 %v1398_v18  ;;  %v1486_v39 = vor.u32 %v1598_v36, %v1485_v33  ;;  %v1563_v36 = vld [vmem:[%s2206_s3 + $0x98] sm:$0xf0] }
  0x51   :  { %976 = vmatpush.bf16.msra.mxu3 %v1486_v39  ;;  %v1347_v39 = vld [vmem:[%s2206_s3 + $0x9c] sm:$0xf0] }
  0x52   :  { %954 = vmatpush.bf16.msra.mxu0 %v1366_v49  ;;  %v1588_v49 = vld [vmem:[%s2206_s3 + $0x164] sm:$0xf] }
  0x53   :  { %v1462_v52 = vor.u32 %v1588_v49, %v1459_v50  ;;  %v1319_v49 = vld [vmem:[%s2206_s3 + $0x64] sm:$0xf0]  ;;  %v1325_v50 = vld [vmem:[%s2206_s3 + $0x50] sm:$0xf] }
  0x55   :  { %990 = vmatpush.bf16.msrb.mxu2 %v1462_v52 }
  0x56   :  { %955 = vmatpush.bf16.msra.mxu0 %v1338_v1  ;;  %v1430_v1 = vor.u32 %v1584_v62, %v1429_v59  ;;  %v1297_v59 = vld [vmem:[%s2206_s3 + $0x18] sm:$0xf] }
  0x5a   :  { %956 = vmatpush.bf16.msra.mxu0 %v1310_v15  ;;  %v1403_v15 = vld [vmem:[%s2206_s3 + $0x10c] sm:$0xf0] }
  0x5b   :  { %v1406_v18 = vor.u32 %v1574_v14, %v1403_v15 }
  0x5e   :  { %957 = vmatpush.bf16.msra.mxu0 %v1282_v31  ;;  %v1375_v31 = vld [vmem:[%s2206_s3 + $0xd4] sm:$0xf0] }
  0x5f   :  { %v1378_v33 = vor.u32 %v1567_v26, %v1375_v31 }
  0x62   :  { %1002 = vmatpush.bf16.msrb.mxu0 %v1494_v44  ;;  %v1350_v44 = vor.u32 %v1560_v37, %v1347_v39 }
  0x66   :  { %1003 = vmatpush.bf16.msrb.mxu0 %v1466_v55 }
  0x9e   :  { %v1908_v29 = vpop.f32.mrf.mxu0 }
  0x9f   :  { %v1910_v30 = vpop.f32.mrf.mxu1  ;;  %v445_v22 = vadd.f32 %v1908_v29, %v136_v4  ;;  %v1566_v29 = vld [vmem:[%s2206_s3 + $0xb4] sm:$0xf]  ;;  %v1585_v4 = vld [vmem:[%s2206_s3 + $0x148] sm:$0xf0] }
  0xa0   :  { %v1370_v35 = vor.u32 %v1566_v29, %v1367_v32  ;;  %v1438_v6 = vor.u32 %v1585_v4, %v1437_v3  ;;  %v1381_v29 = vld [vmem:[%s2206_s3 + $0xc0] sm:$0xf]  ;;  %v1571_v32 = vld [vmem:[%s2206_s3 + $0xd8] sm:$0xf0] }
  0xa1   :  { %v458_v43 = vadd.f32 %v1910_v30, %v445_v22  ;;  %v1591_v30 = vld [vmem:[%s2206_s3 + $0x178] sm:$0xf0] }
  0xa2   :  { %967 = vmatpush.bf16.msra.mxu1 %v1370_v35  ;;  %v1458_v51 = vor.u32 %v1591_v30, %v1457_v47  ;;  %1004 = vmatpush.bf16.msrb.mxu0 %v1438_v6  ;;  %v1345_v35 = vld [vmem:[%s2206_s3 + $0x80] sm:$0xf]  ;;  %v1354_v47 = vor.u32 %v1564_v45, %v1353_v40  ;;  %v1553_v30 = vld [vmem:[%s2206_s3 + $0x4c] sm:$0xf] }
  0xa3   :  { %v1322_v53 = vor.u32 %v1553_v30, %v1319_v49 }
  0xa4   :  { %977 = vmatpush.bf16.msra.mxu3 %v1458_v51  ;;  %v1557_v51 = vld [vmem:[%s2206_s3 + $0x68] sm:$0xf0] }
  0xa5   :  { %v1326_v55 = vor.u32 %v1557_v51, %v1325_v50 }
  0xa6   :  { %v446_v57 = vpop.f32.mrf.mxu0  ;;  %v1972_v63 = vpop.f32.mrf.mxu2  ;;  %968 = vmatpush.bf16.msra.mxu1 %v1342_v48  ;;  %1005 = vmatpush.bf16.msrb.mxu0 %v1410_v21  ;;  %v1556_v48 = vld [vmem:[%s2206_s3 + $0x60] sm:$0xf0] }
  0xa7   :  { %v459_v58 = vpop.f32.mrf.mxu1  ;;  %v1980_v5 = vpop.f32.mrf.mxu3  ;;  %v471_v56 = vadd.f32 %v1972_v63, %v458_v43  ;;  %v1552_v57 = vld [vmem:[%s2206_s3 + $0x44] sm:$0xf]  ;;  %v1581_v63 = vld [vmem:[%s2206_s3 + $0x12c] sm:$0xf]  ;;  %v1346_v43 = vor.u32 %v1563_v36, %v1345_v35  ;;  %v1318_v52 = vor.u32 %v1556_v48, %v1317_v46 }
  0xa8   :  { %v1311_v58 = vld [vmem:[%s2206_s3 + $0x5c] sm:$0xf0]  ;;  %v1434_v2 = vor.u32 %v1581_v63, %v1431_v0  ;;  %978 = vmatpush.bf16.msra.mxu3 %v1430_v1 }
  0xa9   :  { %v1314_v61 = vor.u32 %v1552_v57, %v1311_v58  ;;  %v484_v7 = vadd.f32 %v1980_v5, %v471_v56  ;;  %v1577_v5 = vld [vmem:[%s2206_s3 + $0x108] sm:$0xf0]  ;;  %v1546_v57 = vld [vmem:[%s2206_s3 + $0x14] sm:$0xf]  ;;  %v1291_v58 = vld [vmem:[%s2206_s3 + $0x2c] sm:$0xf0] }
  0xaa   :  { %991 = vmatpush.bf16.msrb.mxu2 %v1434_v2  ;;  %v1402_v17 = vor.u32 %v1577_v5, %v1401_v10  ;;  %v1549_v56 = vld [vmem:[%s2206_s3 + $0x28] sm:$0xf0]  ;;  %v1294_v0 = vor.u32 %v1546_v57, %v1291_v58  ;;  %v610_v5 = vld [vmem:[%s2207_s4] sm:$0x7f]  ;;  %s1645_s4 = smov [#allocation2]  }
  0xab   :  { %969 = vmatpush.bf16.msra.mxu1 %v1314_v61  ;;  %v1290_v63 = vor.u32 %v1549_v56, %v1289_v54  ;;  %v611_v14 = vunpack.c.l.bf16 %v610_v5  ;;  %s1062_s9 = sshll.u32 %s1645_s4, 4  ;;  %s1063_s9 = int_to_ptr.vmem [resolvable:$true] %s1062_s9 }
  0xac   :  { %979 = vmatpush.bf16.msra.mxu3 %v1402_v17 }
  0xad   :  { %v617_v15 = vperm.slane %v611_v14, 4  ;;  %v615_v19 = vperm.slane %v611_v14, 0  ;;  %v616_v20 = vperm.slane %v611_v14, 2 }
  0xae   :  { %v472_v27 = vpop.f32.mrf.mxu2  ;;  %992 = vmatpush.bf16.msrb.mxu2 %v1406_v18 }
  0xaf   :  { %v485_v34 = vpop.f32.mrf.mxu3  ;;  %970 = vmatpush.bf16.msra.mxu1 %v1286_v13  ;;  %v631_v17 = vperm.slane %v617_v15, 0  ;;  %v629_v25 = vperm.slane %v615_v19, 0  ;;  %v630_v26 = vperm.slane %v616_v20, 0 }
  0xb0   :  { %v1382_v34 = vor.u32 %v1571_v32, %v1381_v29  ;;  %980 = vmatpush.bf16.msra.mxu3 %v1374_v28 }
  0xb2   :  { %993 = vmatpush.bf16.msrb.mxu2 %v1378_v33  ;;  %1006 = vmatpush.bf16.msrb.mxu0 %v1382_v34  ;;  %v612_v34 = vunpack.c.h.bf16 %v610_v5 }
  0xb4   :  { %981 = vmatpush.bf16.msra.mxu3 %v1346_v43  ;;  %v619_v49 = vperm.slane %v612_v34, 0  ;;  %v620_v50 = vperm.slane %v612_v34, 2 }
  0xb6   :  { %v522_v60 = vpop.f32.mrf.mxu2  ;;  %994 = vmatpush.bf16.msrb.mxu2 %v1350_v44  ;;  %1007 = vmatpush.bf16.msrb.mxu0 %v1354_v47  ;;  %v633_v57 = vperm.slane %v619_v49, 0  ;;  %v634_v58 = vperm.slane %v620_v50, 0 }
  0xb8   :  { %982 = vmatpush.bf16.msra.mxu3 %v1318_v52 }
  0xba   :  { %995 = vmatpush.bf16.msrb.mxu2 %v1322_v53  ;;  %1008 = vmatpush.bf16.msrb.mxu0 %v1326_v55 }
  0xbc   :  { %983 = vmatpush.bf16.msra.mxu3 %v1290_v63 }
  0xbe   :  { %v496_v11 = vpop.f32.mrf.mxu0  ;;  %v524_v23 = vpop.f32.mrf.mxu2  ;;  %996 = vmatpush.bf16.msrb.mxu2 %v1294_v0 }
  0xbf   :  { %v509_v12 = vpop.f32.mrf.mxu1  ;;  %v497_v16 = vadd.f32 %v496_v11, %v484_v7 }
  0xc1   :  { %v510_v22 = vadd.f32 %v509_v12, %v497_v16  ;;  %v618_v16 = vperm.slane %v611_v14, 6 }
  0xc3   :  { %v523_v27 = vadd.f32 %v522_v60, %v510_v22  ;;  %v1550_v60 = vld [vmem:[%s2206_s3 + $0x30] sm:$0xf0]  ;;  %v632_v18 = vperm.slane %v618_v16, 0 }
  0xc4   :  { %v1298_v1 = vor.u32 %v1550_v60, %v1297_v59 }
  0xc5   :  { %v1270_v38 = vmul.f32 -1.442695, %v523_v27 }
  0xc6   :  { %v498_v41 = vpop.f32.mrf.mxu0  ;;  %1009 = vmatpush.bf16.msrb.mxu0 %v1298_v1 }
  0xc7   :  { %v511_v42 = vpop.f32.mrf.mxu1  ;;  %1601 = vpow2.f32 %v1270_v38  ;;  %v621_v41 = vperm.slane %v612_v34, 4 }
  0xc9   :  { %v635_v47 = vperm.slane %v621_v41, 0 }
  0xcd   :  { %v1602_v61 = vpop.eup %1601 }
  0xce   :  { %v529_v62 = vadd.f32 1.0, %v1602_v61 }
  0xd0   :  { %1603 = vrcp.f32 %v529_v62  ;;  %v541_v6 = vand.u32 2147483648, %v529_v62  ;;  %v539_v8 = vand.u32 2147483647, %v529_v62  ;;  %vm535_vm2 = vweird.f32 %v529_v62 }
  0xd2   :  { %v542_v10 = vor.u32 1.1754944e-38, %v541_v6  ;;  %vm540_vm4 = vcmp.eq.f32.partialorder %v539_v8, 8.507059e+37 }
  0xd6   :  { %v1604_v2 = vpop.eup %1603 }
  0xd7   :  { %v531_v3 = vmul.f32 %v1604_v2, %v529_v62  ;;  %vm536_vm1 = vweird.f32 %v1604_v2 }
  0xd8   :  { %vm537_vm3 = vmor %vm535_vm2, %vm536_vm1 }
  0xd9   :  { %v532_v4 = vsub.f32 1.0, %v531_v3 }
  0xdb   :  { %v533_v7 = vmul.f32 %v1604_v2, %v532_v4 }
  0xdd   :  { %v534_v9 = vadd.f32 %v1604_v2, %v533_v7 }
  0xdf   :  { %v538_v11 = vsel %vm537_vm3, %v1604_v2, %v534_v9 }
  0xe0   :  { %v543_v12 = vsel %vm540_vm4, %v542_v10, %v538_v11 }
  0xe1   :  { %v545_v13 = vpack.c.bf16 %v543_v12, %v543_v12 }
  0xe3   :  { %932 = vmatmul.bf16.vlgmr.msrb.gmra.mxu3 %v545_v13  ;;  %945 = vmatmul.bf16.vlgmr.msra.gmra.mxu2 %v545_v13 }
  0xe4   :  { %958 = vmatmul.bf16.vlgmr.msra.gmra.mxu0 %v545_v13  ;;  %971 = vmatmul.bf16.vlgmr.msra.gmra.mxu1 %v545_v13 }
  0xf3   :  { %984 = vmatmul.bf16.vlgmr.msra.gmra.mxu3 %v545_v13  ;;  %997 = vmatmul.bf16.vlgmr.msrb.gmra.mxu2 %v545_v13 }
  0xf4   :  { %1010 = vmatmul.bf16.vlgmr.msrb.gmra.mxu0 %v545_v13 }
 0x161   :  { %v959_v21 = vpop.f32.mrf.mxu0  ;;  %v972_v22 = vpop.f32.mrf.mxu1 }
 0x162   :  { %v960_v23 = vadd.f32 %v959_v21, %v631_v17  ;;  %v973_v24 = vadd.f32 %v972_v22, %v632_v18 }
 0x164   :  { %v1017_v27 = vpack.c.bf16 %v960_v23, %v960_v23  ;;  %v1018_v28 = vpack.c.bf16 %v973_v24, %v973_v24 }
 0x166   :  { %v1024_v31 = vunpack.c.l.bf16 %v1017_v27  ;;  %v1025_v29 = vunpack.c.l.bf16 %v1018_v28  ;;  %v933_v32 = vpop.f32.mrf.mxu3  ;;  %v946_v33 = vpop.f32.mrf.mxu2 }
 0x167   :  { %v934_v35 = vadd.f32 %v933_v32, %v629_v25  ;;  %v947_v36 = vadd.f32 %v946_v33, %v630_v26 }
 0x168   :  { %1605 = vtanh.f32 %v1024_v31 }
 0x169   :  { %1607 = vtanh.f32 %v1025_v29  ;;  %v1015_v37 = vpack.c.bf16 %v934_v35, %v934_v35  ;;  %v1016_v38 = vpack.c.bf16 %v947_v36, %v947_v36  ;;  %v961_v39 = vpop.f32.mrf.mxu0  ;;  %v974_v40 = vpop.f32.mrf.mxu1 }
 0x16b   :  { %v1022_v42 = vunpack.c.l.bf16 %v1015_v37  ;;  %v1023_v43 = vunpack.c.l.bf16 %v1016_v38 }
 0x16d   :  { %1609 = vtanh.f32 %v1022_v42 }
 0x16e   :  { %v1606_v44 = vpop.eup %1605  ;;  %1611 = vtanh.f32 %v1023_v43  ;;  %v935_v45 = vpop.f32.mrf.mxu3 }
 0x16f   :  { %v948_v46 = vpop.f32.mrf.mxu2  ;;  %v1608_v48 = vpop.eup %1607  ;;  %v1038_v30 = vpack.c.bf16 %v1606_v44, %v1606_v44 }
 0x170   :  { %v1039_v51 = vpack.c.bf16 %v1608_v48, %v1608_v48 }
 0x171   :  { %v1045_v52 = vunpack.c.l.bf16 %v1038_v30  ;;  %v1011_v53 = vpop.f32.mrf.mxu0 }
 0x172   :  { %v1046_v54 = vunpack.c.l.bf16 %v1039_v51  ;;  %v1012_v55 = vadd.f32 %v1011_v53, %v635_v47 }
 0x173   :  { %v1610_v56 = vpop.eup %1609  ;;  %1052 = vst [vmem:[#allocation2 + $0x10] sm:$0xff] %v1045_v52 }
 0x174   :  { %v1612_v59 = vpop.eup %1611  ;;  %1053 = vst [vmem:[#allocation2 + $0x18] sm:$0xff] %v1046_v54  ;;  %v1036_v60 = vpack.c.bf16 %v1610_v56, %v1610_v56  ;;  %v1021_v61 = vpack.c.bf16 %v1012_v55, %v1012_v55 }
 0x175   :  { %v1037_v62 = vpack.c.bf16 %v1612_v59, %v1612_v59 }
 0x176   :  { %v1043_v63 = vunpack.c.l.bf16 %v1036_v60  ;;  %v1028_v0 = vunpack.c.l.bf16 %v1021_v61  ;;  %v985_v1 = vpop.f32.mrf.mxu3 }
 0x177   :  { %v998_v2 = vpop.f32.mrf.mxu2  ;;  %v1044_v3 = vunpack.c.l.bf16 %v1037_v62  ;;  %v986_v4 = vadd.f32 %v985_v1, %v633_v57 }
 0x178   :  { %v999_v6 = vadd.f32 %v998_v2, %v634_v58  ;;  %1050 = vst [vmem:[#allocation2] sm:$0xff] %v1043_v63  ;;  %1613 = vtanh.f32 %v1028_v0 }
 0x179   :  { %1051 = vst [vmem:[#allocation2 + $0x8] sm:$0xff] %v1044_v3  ;;  %v1019_v7 = vpack.c.bf16 %v986_v4, %v986_v4  ;;  %v1013_v9 = vpop.f32.mrf.mxu0 }
 0x17a   :  { %v1020_v8 = vpack.c.bf16 %v999_v6, %v999_v6 }
 0x17b   :  { %v1026_v10 = vunpack.c.l.bf16 %v1019_v7 }
 0x17c   :  { %v1027_v11 = vunpack.c.l.bf16 %v1020_v8 }
 0x17d   :  { %1615 = vtanh.f32 %v1026_v10 }
 0x17e   :  { %v1614_v12 = vpop.eup %1613  ;;  %1617 = vtanh.f32 %v1027_v11  ;;  %v987_v13 = vpop.f32.mrf.mxu3 }
 0x17f   :  { %v1000_v5 = vpop.f32.mrf.mxu2  ;;  %v1042_v14 = vpack.c.bf16 %v1614_v12, %v1614_v12 }
 0x181   :  { %v1049_v15 = vunpack.c.l.bf16 %v1042_v14 }
 0x183   :  { %v1616_v16 = vpop.eup %1615  ;;  %1056 = vst.msk [vmem:[#allocation2 + $0x30] sm:$0xff] %vm431_vm0, %v1049_v15 }
 0x184   :  { %v1618_v17 = vpop.eup %1617  ;;  %v1040_v18 = vpack.c.bf16 %v1616_v16, %v1616_v16 }
 0x185   :  { %v1041_v19 = vpack.c.bf16 %v1618_v17, %v1618_v17 }
 0x186   :  { %v1047_v20 = vunpack.c.l.bf16 %v1040_v18 }
 0x187   :  { %v1048_v21 = vunpack.c.l.bf16 %v1041_v19 }
 0x188   :  { %1054 = vst [vmem:[#allocation2 + $0x20] sm:$0xff] %v1047_v20 }
 0x189   :  { %1055 = vst [vmem:[#allocation2 + $0x28] sm:$0xff] %v1048_v21 }
 0x18a   :  { %1067 = dma.vmem_to_hbm [thread:$0]  %s1063_s9, 896, %s1065_s10, [#allocation3]  }
 0x18b   :  { %1643 = dma.done.wait [#allocation3], 896  }
 0x18c   :  { %1644 = vsyncadd [#allocation3], 4294966400 }
 0x18d   :  { %1072 = vsyncpa [#allocation3], 1 }

</bundles_post_ra>
